<compile_context>
chip_gen: v7x
topology: tpu7x:2x2x1
jax: 0.10.0
libtpu: 0.0.40
codegen_flags: <defaults>
</compile_context>

<pallas_src>
import math

import jax
import jax.numpy as jnp
from jax import lax
from jax.experimental import pallas as pl
from jax.experimental.pallas import tpu as pltpu

K = 5     # conv kernel size
PAD = 2   # conv padding (and per-image zero gap on each side / H halo)


def _grad_comp4_kernel(x_ref, o_ref):
    # x_ref: (rb, H+4, L)  input block, 2 zero rows top/bottom per row-group,
    #                      G images per lane row as [2z | W | 2z] slots.
    # o_ref: (rb, H,   L)  output block (gap/pad columns hold garbage, the
    #                      wrapper discards them when unpacking).
    H = o_ref.shape[1]

    # ---- 5-tap H (sublane) box sum: five sublane-shifted window loads from the
    #      halo-padded input block (zero halo rows give the conv zero padding).
    x_c = x_ref[:, PAD:PAD + H, :].astype(jnp.float32)      # center window
    rowsum = x_c
    for d in (0, 1, 3, 4):
        rowsum = rowsum + x_ref[:, d:d + H, :].astype(jnp.float32)

    # ---- 5-tap W (lane) box sum: circular lane rolls are exact because every
    #      image slot is flanked by >= 2 zero columns (gaps / trailing pad), so
    #      nothing bleeds across image seams and no masks are needed.
    L = rowsum.shape[-1]
    box = rowsum
    for d in (1, 2):
        box = box + pltpu.roll(rowsum, d, axis=2) + pltpu.roll(rowsum, L - d, axis=2)

    # depthwise 5x5 conv (all taps 1, center -24)  ==  box - 25 * center
    conv = box - 25.0 * x_c
    out = 0.9 * x_c + (0.25 / 24.0) * jnp.maximum(conv, 0.0)
    o_ref[...] = out.astype(o_ref.dtype)


def _round_up(n, m):
    return -(-n // m) * m


def _vmem_capacity_bytes():
    try:
        cap = int(pltpu.get_tpu_info().vmem_capacity_bytes)
        if cap > 0:
            return cap
    except Exception:
        pass
    return 64 << 20          # conservative (v7x-sized) fallback


def _plan(BC, H, W, itemsize):
    """Pick the lane packing (G images per row) and block size (rb row-groups)."""
    Ws = W + 2 * PAD                               # per-image lane slot width
    g0 = 128 // math.gcd(Ws, 128)                  # smallest G with G*Ws % 128 == 0
    max_lanes = 4096
    if g0 <= BC and g0 * Ws <= max_lanes:
        G = g0                                     # exactly lane-aligned rows
    else:
        G = max(1, min(BC, max(1, max_lanes // Ws)))
    L = _round_up(G * Ws, 128)                     # lane-dense packed row width
    R0 = -(-BC // G)                               # row-groups actually needed

    # in + out double-buffered plus a few live f32 temporaries.
    vmem_limit = max(32 << 20, min(_vmem_capacity_bytes() * 3 // 4, 96 << 20))
    block_budget = vmem_limit // 10
    bytes_per_rowgroup = _round_up(H + 2 * PAD, 8) * L * max(itemsize, 4)
    rb = max(1, min(R0, block_budget // max(bytes_per_rowgroup, 1)))
    if R0 >= 2:
        rb = min(rb, -(-R0 // 2))                  # >= 2 grid steps for megacore
    R = _round_up(R0, rb)                          # pad: no "divides BC" needed
    return G, L, R, rb, vmem_limit


@jax.jit
def gradient_computation4(img):
    """img: (B, C, H, W) -> (B, C, H, W); matches GradientComputation4.forward."""
    B, C, H, W = img.shape
    BC = B * C
    Ws = W + 2 * PAD
    Hp = H + 2 * PAD
    G, L, R, rb, vmem_limit = _plan(BC, H, W, img.dtype.itemsize)

    # ---- pack: (BC, H, W) -> (R, H+4, L) lane-dense rows of zero-gapped slots.
    x = img.reshape(BC, H, W)
    xp = jnp.pad(x, ((0, R * G - BC), (PAD, PAD), (PAD, PAD)))    # (R*G, Hp, Ws)
    xp = xp.reshape(R, G, Hp, Ws).transpose(0, 2, 1, 3).reshape(R, Hp, G * Ws)
    xp = jnp.pad(xp, ((0, 0), (0, 0), (0, L - G * Ws)))           # (R, Hp, L)

    # TODO(synk): tile H with a 2-row halo when a single (Hp, L) row-group
    # exceeds the VMEM budget, and skip the packing pass entirely when W is
    # already a large multiple of 128 (use in-kernel edge masks instead).

    grid = R // rb
    yp = pl.pallas_call(
        _grad_comp4_kernel,
        out_shape=jax.ShapeDtypeStruct((R, H, L), img.dtype),
        grid_spec=pltpu.PrefetchScalarGridSpec(
            num_scalar_prefetch=0,
            grid=(grid,),
            in_specs=[pl.BlockSpec((rb, Hp, L), lambda i: (i, 0, 0))],
            out_specs=pl.BlockSpec((rb, H, L), lambda i: (i, 0, 0)),
        ),
        compiler_params=pltpu.CompilerParams(
            dimension_semantics=("parallel",),
            vmem_limit_bytes=vmem_limit,
        ),
        cost_estimate=pl.CostEstimate(
            flops=14 * R * H * L,
            transcendentals=0,
            bytes_accessed=(R * Hp * L + R * H * L) * img.dtype.itemsize,
        ),
    )(xp)

    # ---- unpack: (R, H, L) -> (B, C, H, W), dropping gaps / padding.
    y = yp[:, :, :G * Ws].reshape(R, H, G, Ws).transpose(0, 2, 1, 3)
    y = y.reshape(R * G, H, Ws)[:BC, :, PAD:PAD + W]
    return y.reshape(B, C, H, W)


def _reference(img):
    """Pure-JAX reference using lax depthwise conv (matches the PyTorch module)."""
    B, C, H, W = img.shape
    w = jnp.ones((C, 1, K, K), jnp.float32).at[:, :, 2, 2].set(-24.0)
    conv = lax.conv_general_dilated(
        img, w,
        window_strides=(1, 1),
        padding=((PAD, PAD), (PAD, PAD)),
        dimension_numbers=("NCHW", "OIHW", "NCHW"),
        feature_group_count=C,
    )
    relu = jnp.maximum(conv, 0.0)
    return 0.9 * img + 0.25 * (relu / 24.0)


if __name__ == "__main__":
    key = jax.random.PRNGKey(0)
    B, C, H, W = 2, 4, 16, 16
    img = jax.random.normal(key, (B, C, H, W), dtype=jnp.float32)

    out = jax.block_until_ready(gradient_computation4(img))
    ref = jax.block_until_ready(_reference(img))

    assert out.shape == (B, C, H, W)
    assert jnp.allclose(out, ref, atol=1e-5, rtol=1e-5), (
        float(jnp.max(jnp.abs(out - ref))))

    print("KERNEL_OK")
</pallas_src>

<mosaic_0001>
module attributes {stable_mosaic.version = 11 : i64} {
  func.func @_grad_comp4_kernel(%arg0: i32, %arg1: memref<1x20x256xf32, #tpu.memory_space<vmem>>, %arg2: memref<1x16x256xf32, #tpu.memory_space<vmem>>) attributes {dimension_semantics = [#tpu.dimension_semantics<parallel>], iteration_bounds = array<i64: 1>, scalar_prefetch = 0 : i64, scratch_operands = 0 : i64, tpu.core_type = #tpu.core_type<tc>, window_params = [{transform_indices = @transform_0, window_bounds = array<i64: 1, 20, 256>}, {transform_indices = @transform_1, window_bounds = array<i64: 1, 16, 256>}]} {
    %c0 = arith.constant 0 : index
    %c2 = arith.constant 2 : index
    %c0_0 = arith.constant 0 : index
    %0 = vector.load %arg1[%c0, %c2, %c0_0] : memref<1x20x256xf32, #tpu.memory_space<vmem>>, vector<1x16x256xf32>
    %c0_1 = arith.constant 0 : index
    %c0_2 = arith.constant 0 : index
    %c0_3 = arith.constant 0 : index
    %1 = vector.load %arg1[%c0_1, %c0_2, %c0_3] : memref<1x20x256xf32, #tpu.memory_space<vmem>>, vector<1x16x256xf32>
    %2 = arith.addf %0, %1 : vector<1x16x256xf32>
    %c0_4 = arith.constant 0 : index
    %c1 = arith.constant 1 : index
    %c0_5 = arith.constant 0 : index
    %3 = vector.load %arg1[%c0_4, %c1, %c0_5] : memref<1x20x256xf32, #tpu.memory_space<vmem>>, vector<1x16x256xf32>
    %4 = arith.addf %2, %3 : vector<1x16x256xf32>
    %c0_6 = arith.constant 0 : index
    %c3 = arith.constant 3 : index
    %c0_7 = arith.constant 0 : index
    %5 = vector.load %arg1[%c0_6, %c3, %c0_7] : memref<1x20x256xf32, #tpu.memory_space<vmem>>, vector<1x16x256xf32>
    %6 = arith.addf %4, %5 : vector<1x16x256xf32>
    %c0_8 = arith.constant 0 : index
    %c4 = arith.constant 4 : index
    %c0_9 = arith.constant 0 : index
    %7 = vector.load %arg1[%c0_8, %c4, %c0_9] : memref<1x20x256xf32, #tpu.memory_space<vmem>>, vector<1x16x256xf32>
    %8 = arith.addf %6, %7 : vector<1x16x256xf32>
    %c1_i32 = arith.constant 1 : i32
    %9 = tpu.dynamic_rotate %8 by %c1_i32 dim 2 : vector<1x16x256xf32>, i32 -> vector<1x16x256xf32>
    %10 = arith.addf %8, %9 : vector<1x16x256xf32>
    %c255_i32 = arith.constant 255 : i32
    %11 = tpu.dynamic_rotate %8 by %c255_i32 dim 2 : vector<1x16x256xf32>, i32 -> vector<1x16x256xf32>
    %12 = arith.addf %10, %11 : vector<1x16x256xf32>
    %c2_i32 = arith.constant 2 : i32
    %13 = tpu.dynamic_rotate %8 by %c2_i32 dim 2 : vector<1x16x256xf32>, i32 -> vector<1x16x256xf32>
    %14 = arith.addf %12, %13 : vector<1x16x256xf32>
    %c254_i32 = arith.constant 254 : i32
    %15 = tpu.dynamic_rotate %8 by %c254_i32 dim 2 : vector<1x16x256xf32>, i32 -> vector<1x16x256xf32>
    %16 = arith.addf %14, %15 : vector<1x16x256xf32>
    %cst = arith.constant 2.500000e+01 : f32
    %17 = vector.broadcast %cst : f32 to vector<1x16x256xf32>
    %18 = arith.mulf %17, %0 : vector<1x16x256xf32>
    %19 = arith.subf %16, %18 : vector<1x16x256xf32>
    %cst_10 = arith.constant 0.899999976 : f32
    %20 = vector.broadcast %cst_10 : f32 to vector<1x16x256xf32>
    %21 = arith.mulf %20, %0 : vector<1x16x256xf32>
    %cst_11 = arith.constant 0.000000e+00 : f32
    %22 = vector.broadcast %cst_11 : f32 to vector<1x16x256xf32>
    %23 = arith.maximumf %19, %22 : vector<1x16x256xf32>
    %cst_12 = arith.constant 0.010416667 : f32
    %24 = vector.broadcast %cst_12 : f32 to vector<1x16x256xf32>
    %25 = arith.mulf %24, %23 : vector<1x16x256xf32>
    %26 = arith.addf %21, %25 : vector<1x16x256xf32>
    %c0_13 = arith.constant 0 : index
    %c0_14 = arith.constant 0 : index
    %c0_15 = arith.constant 0 : index
    %27 = vector.load %arg2[%c0_13, %c0_14, %c0_15] : memref<1x16x256xf32, #tpu.memory_space<vmem>>, vector<1x16x256xf32>
    tpu.vector_store %arg2[%c0_13, %c0_14, %c0_15], %26 {strides = array<i32>} : memref<1x16x256xf32, #tpu.memory_space<vmem>>, vector<1x16x256xf32>,
    return
  }
  func.func @transform_0(%arg0: i32) -> (i32, i32, i32) {
    %c0_i32 = arith.constant 0 : i32
    %c0_i32_0 = arith.constant 0 : i32
    %c0_i32_1 = arith.constant 0 : i32
    return %arg0, %c0_i32, %c0_i32_0 : i32, i32, i32
  }
  func.func @transform_1(%arg0: i32) -> (i32, i32, i32) {
    %c0_i32 = arith.constant 0 : i32
    %c0_i32_0 = arith.constant 0 : i32
    %c0_i32_1 = arith.constant 0 : i32
    return %arg0, %c0_i32, %c0_i32_0 : i32, i32, i32
  }
}

</mosaic_0001>

<bundles_post_ra>
// kernel: gradient_computation4.1
= control target key start
LH: loop header
LB: loop body
LE: loop exit
PB: predicated region body
PF: predicated region fallthrough
CT: control target
= control target key end

     0   :  { %vm20_vm0 = vcmask 1041408   ;;  %vm47_vm1 = vcmask 1040384   ;;  %vm78_vm2 = vcmask 1046528   ;;  %vm109_vm3 = vcmask 1045504   ;;  %s363_s17 = smov 127   ;;  %s364_s18 = smov 2   ;;  %s598_s0 = inlined_call_operand.vmem [shape: f32[1,20,256], index: 0, kind: input, shape index: {}]   ;;  %s599_s1 = inlined_call_operand.vmem [shape: f32[1,16,256], index: 1, kind: output, shape index: {}]  }
   0x1   :  { %v379_v0 = vld [vmem:[%s598_s0 + $0x8] sm:$0xfc]  ;;  %v384_v1 = vld [vmem:[%s598_s0 + $0x18] sm:$0xff]  ;;  %v423_v22 = vld [vmem:[%s598_s0] sm:$0xfc]  ;;  %s365_s19 = smov 126  }
   0x2   :  { %v15_v2 = vld [vmem:[%s598_s0 + $0x8] sm:$0xff]  ;;  %v25_v4 = vrot.slane %v384_v1, 6  ;;  %v52_v6 = vrot.slane %v384_v1, 7  ;;  %v83_v7 = vrot.slane %v384_v1, 1  ;;  %v114_v11 = vrot.slane %v384_v1, 2  ;;  %v428_v23 = vld [vmem:[%s598_s0 + $0x10] sm:$0xff] }
   0x3   :  { %v22_v3 = vrot.slane %v15_v2, 6  ;;  %v40_v5 = vld [vmem:[%s598_s0 + $0x8] sm:$0xfe]  ;;  %v14_v24 = vld [vmem:[%s598_s0] sm:$0xff]  ;;  %v23_v34 = vrot.slane %v428_v23, 6  ;;  %v50_v38 = vrot.slane %v428_v23, 7 }
   0x4   :  { %v49_v8 = vrot.slane %v40_v5, 7  ;;  %v71_v9 = vld [vmem:[%s598_s0 + $0x8] sm:$0xf8]  ;;  %v401_v10 = vld [vmem:[%s598_s0 + $0x28] sm:$0x7]  ;;  %v21_v28 = vrot.slane %v14_v24, 6 }
   0x5   :  { %v26_v12 = vsel %vm20_vm0, %v22_v3, %v25_v4  ;;  %v34_v13 = vadd.f32 %v22_v3, %v379_v0  ;;  %v82_v14 = vrot.slane %v71_v9, 1  ;;  %v87_v15 = vrot.slane %v401_v10, 1  ;;  %v102_v16 = vld [vmem:[%s598_s0 + $0x8] sm:$0xf0]  ;;  %v413_v17 = vld [vmem:[%s598_s0 + $0x28] sm:$0xf] }
   0x6   :  { %v36_v18 = vadd.f32 %v26_v12, %v384_v1  ;;  %v53_v19 = vsel %vm47_vm1, %v49_v8, %v52_v6  ;;  %v113_v20 = vrot.slane %v102_v16, 2  ;;  %v118_v21 = vrot.slane %v413_v17, 2  ;;  %v39_v29 = vld [vmem:[%s598_s0] sm:$0xfe]  ;;  %v468_v50 = vld [vmem:[%s598_s0 + $0x28] sm:$0x3] }
   0x7   :  { %v65_v25 = vadd.f32 %v49_v8, %v34_v13  ;;  %v84_v26 = vsel %vm78_vm2, %v82_v14, %v83_v7  ;;  %v88_v27 = vsel %vm78_vm2, %v83_v7, %v87_v15  ;;  %v70_v30 = vld [vmem:[%s598_s0] sm:$0xf8]  ;;  %v33_v36 = vadd.f32 %v21_v28, %v423_v22  ;;  %v72_v39 = vld [vmem:[%s598_s0 + $0x20] sm:$0x7]  ;;  %v42_v55 = vld [vmem:[%s598_s0 + $0x28] sm:$0x1] }
   0x8   :  { %v67_v31 = vadd.f32 %v53_v19, %v36_v18  ;;  %v115_v32 = vsel %vm109_vm3, %v113_v20, %v114_v11  ;;  %v119_v33 = vsel %vm109_vm3, %v114_v11, %v118_v21  ;;  %v48_v37 = vrot.slane %v39_v29, 7  ;;  %v101_v40 = vld [vmem:[%s598_s0] sm:$0xf0]  ;;  %v103_v49 = vld [vmem:[%s598_s0 + $0x20] sm:$0xf] }
   0x9   :  { %v96_v35 = vadd.f32 %v84_v26, %v65_v25  ;;  %v24_v42 = vsel %vm20_vm0, %v21_v28, %v23_v34  ;;  %v79_v43 = vrot.slane %v70_v30, 1  ;;  %v80_v44 = vrot.slane %v428_v23, 1  ;;  %v479_v56 = vld [vmem:[%s598_s0 + $0x20] sm:$0x3] }
   0xa   :  { %v98_v41 = vadd.f32 %v88_v27, %v67_v31  ;;  %v35_v46 = vadd.f32 %v24_v42, %v428_v23  ;;  %v51_v47 = vsel %vm47_vm1, %v48_v37, %v50_v38  ;;  %v64_v48 = vadd.f32 %v48_v37, %v33_v36  ;;  %v41_v61 = vld [vmem:[%s598_s0 + $0x20] sm:$0x1]  ;;  %s362_s0 = smov 1  }
   0xb   :  { %v458_v45 = vadd.f32 %v115_v32, %v96_v35  ;;  %v81_v52 = vsel %vm78_vm2, %v79_v43, %v80_v44  ;;  %v85_v53 = vrot.slane %v72_v39, 1  ;;  %v110_v54 = vrot.slane %v101_v40, 2 }
   0xc   :  { %v470_v51 = vadd.f32 %v119_v33, %v98_v41  ;;  %v66_v58 = vadd.f32 %v51_v47, %v35_v46  ;;  %v95_v59 = vadd.f32 %v81_v52, %v64_v48  ;;  %v111_v60 = vrot.slane %v428_v23, 2 }
   0xd   :  { %v141_v57 = vrot.slane %v458_v45, 2  ;;  %v86_v63 = vsel %vm78_vm2, %v80_v44, %v85_v53  ;;  %v116_v2 = vrot.slane %v103_v49, 2  ;;  %v38_v3 = vadd.f32 %v25_v4, %v468_v50 }
   0xe   :  { %v142_v62 = vrot.slane %v470_v51, 2  ;;  %v97_v5 = vadd.f32 %v86_v63, %v66_v58  ;;  %v112_v7 = vsel %vm109_vm3, %v110_v54, %v111_v60  ;;  %v56_v8 = vrot.slane %v42_v55, 7 }
   0xf   :  { %v37_v9 = vadd.f32 %v23_v34, %v479_v56  ;;  %v117_v12 = vsel %vm109_vm3, %v111_v60, %v116_v2  ;;  %v493_v13 = vadd.f32 %v112_v7, %v95_v59  ;;  %v54_v14 = vrot.slane %v41_v61, 7 }
  0x10   :  { %v143_v11 = vsel %vm109_vm3, %v141_v57, %v142_v62  ;;  %v495_v16 = vadd.f32 %v117_v12, %v97_v5  ;;  %v57_v4 = vsel %vm47_vm1, %v52_v6, %v56_v8  ;;  %v160_v33 = vlaneseq }
  0x11   :  { %156 = vrot.lane.b32.xlu1 %v143_v11, %s362_s0  ;;  %v138_v18 = vrot.slane %v493_v13, 2  ;;  %v69_v19 = vadd.f32 %v57_v4, %v38_v3  ;;  %v55_v20 = vsel %vm47_vm1, %v50_v38, %v54_v14  ;;  %v526_v54 = vmul.f32 25.0, %v468_v50 }
  0x12   :  { %v139_v24 = vrot.slane %v495_v16, 2  ;;  %v68_v25 = vadd.f32 %v55_v20, %v37_v9  ;;  %v516_v36 = vand.u32 127, %v160_v33  ;;  %v529_v63 = vmul.f32 0.9, %v479_v56 }
  0x13   :  { %v100_v26 = vadd.f32 %v87_v15, %v69_v19  ;;  %v297_v33 = vmul.f32 25.0, %v384_v1 }
  0x14   :  { %v140_v27 = vsel %vm109_vm3, %v138_v18, %v139_v24  ;;  %v99_v28 = vadd.f32 %v85_v53, %v68_v25  ;;  %vm162_vm4 = vcmp.lt.s32.totalorder %v516_v36, 1  ;;  %vm197_vm5 = vcmp.lt.s32.totalorder %v516_v36, 127 }
  0x15   :  { %152 = vrot.lane.b32.xlu0 %v140_v27, %s362_s0  ;;  %v508_v29 = vadd.f32 %v118_v21, %v100_v26  ;;  %vm232_vm6 = vcmp.lt.s32.totalorder %v516_v36, 2  ;;  %vm267_vm7 = vcmp.lt.s32.totalorder %v516_v36, 126  ;;  %v523_v53 = vmul.f32 25.0, %v479_v56 }
  0x16   :  { %v510_v6 = vadd.f32 %v116_v2, %v99_v28  ;;  %v532_v2 = vmul.f32 0.9, %v468_v50  ;;  %v543_v56 = vmul.f32 25.0, %v423_v22  ;;  %v546_v50 = vmul.f32 25.0, %v379_v0 }
  0x17   :  { %v146_v30 = vrot.slane %v508_v29, 2 }
  0x18   :  { %v144_v31 = vrot.slane %v510_v6, 2 }
  0x19   :  { %v147_v32 = vsel %vm109_vm3, %v142_v62, %v146_v30 }
  0x1a   :  { %158 = vrot.lane.b32.xlu1 %v147_v32, %s362_s0  ;;  %v145_v10 = vsel %vm109_vm3, %v139_v24, %v144_v31 }
  0x1b   :  { %154 = vrot.lane.b32.xlu0 %v145_v10, %s362_s0 }
  0x1e   :  { %191 = vrot.lane.b32.xlu1 %v145_v10, %s363_s17 }
  0x1f   :  { %189 = vrot.lane.b32.xlu0 %v140_v27, %s363_s17 }
  0x22   :  { %195 = vrot.lane.b32.xlu1 %v147_v32, %s363_s17 }
  0x23   :  { %193 = vrot.lane.b32.xlu0 %v143_v11, %s363_s17 }
  0x26   :  { %226 = vrot.lane.b32.xlu1 %v145_v10, %s364_s18 }
  0x27   :  { %224 = vrot.lane.b32.xlu0 %v140_v27, %s364_s18 }
  0x2a   :  { %230 = vrot.lane.b32.xlu1 %v147_v32, %s364_s18 }
  0x2b   :  { %228 = vrot.lane.b32.xlu0 %v143_v11, %s364_s18 }
  0x2e   :  { %261 = vrot.lane.b32.xlu1 %v145_v10, %s365_s19 }
  0x2f   :  { %259 = vrot.lane.b32.xlu0 %v140_v27, %s365_s19 }
  0x32   :  { %265 = vrot.lane.b32.xlu1 %v147_v32, %s365_s19 }
  0x33   :  { %263 = vrot.lane.b32.xlu0 %v143_v11, %s365_s19 }
  0x83   :  { %v157_v15 = vpop.permute.xlu1 %156 }
  0x87   :  { %v153_v17 = vpop.permute.xlu0 %152 }
  0x88   :  { %v163_v40 = vsel %vm162_vm4, %v153_v17, %v157_v15  ;;  %v165_v41 = vsel %vm162_vm4, %v157_v15, %v153_v17 }
  0x89   :  { %v171_v55 = vrot.slane %v165_v41, 6  ;;  %v172_v57 = vrot.slane %v163_v40, 6 }
  0x8b   :  { %v183_v14 = vadd.f32 %v171_v55, %v493_v13  ;;  %v184_v4 = vadd.f32 %v172_v57, %v458_v45 }
  0x8c   :  { %v159_v21 = vpop.permute.xlu1 %158 }
  0x8d   :  { %v155_v34 = vpop.permute.xlu0 %154 }
  0x8e   :  { %v164_v42 = vsel %vm162_vm4, %v155_v34, %v159_v21  ;;  %v166_v43 = vsel %vm162_vm4, %v159_v21, %v155_v34 }
  0x8f   :  { %v173_v58 = vrot.slane %v166_v43, 6  ;;  %v175_v59 = vrot.slane %v164_v42, 6 }
  0x90   :  { %v192_v35 = vpop.permute.xlu1 %191 }
  0x91   :  { %v190_v37 = vpop.permute.xlu0 %189  ;;  %v174_v18 = vsel %vm20_vm0, %v171_v55, %v173_v58  ;;  %v176_v19 = vsel %vm20_vm0, %v172_v57, %v175_v59  ;;  %v187_v20 = vadd.f32 %v173_v58, %v510_v6  ;;  %v188_v24 = vadd.f32 %v175_v59, %v508_v29 }
  0x92   :  { %v185_v45 = vadd.f32 %v174_v18, %v495_v16  ;;  %v186_v10 = vadd.f32 %v176_v19, %v470_v51  ;;  %v296_v29 = vmul.f32 25.0, %v428_v23 }
  0x94   :  { %v196_v38 = vpop.permute.xlu1 %195 }
  0x95   :  { %v194_v39 = vpop.permute.xlu0 %193  ;;  %v199_v46 = vsel %vm197_vm5, %v192_v35, %v196_v38  ;;  %v201_v47 = vsel %vm197_vm5, %v196_v38, %v192_v35 }
  0x96   :  { %v198_v49 = vsel %vm197_vm5, %v190_v37, %v194_v39  ;;  %v200_v52 = vsel %vm197_vm5, %v194_v39, %v190_v37  ;;  %v208_v60 = vrot.slane %v199_v46, 6  ;;  %v210_v61 = vrot.slane %v201_v47, 6 }
  0x97   :  { %v206_v3 = vrot.slane %v198_v49, 6  ;;  %v207_v5 = vrot.slane %v200_v52, 6 }
  0x98   :  { %v227_v44 = vpop.permute.xlu1 %226  ;;  %v222_v15 = vadd.f32 %v208_v60, %v187_v20  ;;  %v223_v17 = vadd.f32 %v210_v61, %v188_v24 }
  0x99   :  { %v225_v48 = vpop.permute.xlu0 %224  ;;  %v209_v28 = vsel %vm20_vm0, %v206_v3, %v208_v60  ;;  %v211_v30 = vsel %vm20_vm0, %v207_v5, %v210_v61  ;;  %v218_v21 = vadd.f32 %v206_v3, %v183_v14  ;;  %v219_v6 = vadd.f32 %v207_v5, %v184_v4 }
  0x9a   :  { %v220_v34 = vadd.f32 %v209_v28, %v185_v45  ;;  %v221_v35 = vadd.f32 %v211_v30, %v186_v10 }
  0x9c   :  { %v231_v62 = vpop.permute.xlu1 %230 }
  0x9d   :  { %v234_v7 = vsel %vm232_vm6, %v227_v44, %v231_v62  ;;  %v236_v8 = vsel %vm232_vm6, %v231_v62, %v227_v44  ;;  %v229_v9 = vpop.permute.xlu0 %228 }
  0x9e   :  { %v233_v11 = vsel %vm232_vm6, %v225_v48, %v229_v9  ;;  %v235_v12 = vsel %vm232_vm6, %v229_v9, %v225_v48  ;;  %v243_v25 = vrot.slane %v236_v8, 6  ;;  %v245_v26 = vrot.slane %v234_v7, 6 }
  0x9f   :  { %v241_v31 = vrot.slane %v235_v12, 6  ;;  %v242_v32 = vrot.slane %v233_v11, 6  ;;  %v306_v11 = vmul.f32 0.9, %v423_v22  ;;  %v307_v12 = vmul.f32 0.9, %v379_v0 }
  0xa0   :  { %v262_v27 = vpop.permute.xlu1 %261  ;;  %v257_v37 = vadd.f32 %v243_v25, %v222_v15  ;;  %v258_v38 = vadd.f32 %v245_v26, %v223_v17 }
  0xa1   :  { %v260_v13 = vpop.permute.xlu0 %259  ;;  %v244_v40 = vsel %vm20_vm0, %v241_v31, %v243_v25  ;;  %v246_v41 = vsel %vm20_vm0, %v242_v32, %v245_v26  ;;  %v253_v48 = vadd.f32 %v241_v31, %v218_v21  ;;  %v254_v49 = vadd.f32 %v242_v32, %v219_v6 }
  0xa2   :  { %v255_v57 = vadd.f32 %v244_v40, %v220_v34  ;;  %v256_v58 = vadd.f32 %v246_v41, %v221_v35  ;;  %v308_v25 = vmul.f32 0.9, %v428_v23 }
  0xa4   :  { %v266_v39 = vpop.permute.xlu1 %265 }
  0xa5   :  { %v269_v51 = vsel %vm267_vm7, %v262_v27, %v266_v39  ;;  %v271_v16 = vsel %vm267_vm7, %v266_v39, %v262_v27  ;;  %v264_v42 = vpop.permute.xlu0 %263 }
  0xa6   :  { %v278_v43 = vrot.slane %v269_v51, 6  ;;  %v280_v44 = vrot.slane %v271_v16, 6  ;;  %v268_v46 = vsel %vm267_vm7, %v260_v13, %v264_v42  ;;  %v270_v47 = vsel %vm267_vm7, %v264_v42, %v260_v13 }
  0xa7   :  { %v276_v52 = vrot.slane %v268_v46, 6  ;;  %v277_v55 = vrot.slane %v270_v47, 6 }
  0xa8   :  { %v292_v59 = vadd.f32 %v278_v43, %v257_v37  ;;  %v293_v60 = vadd.f32 %v280_v44, %v258_v38 }
  0xa9   :  { %v279_v61 = vsel %vm20_vm0, %v276_v52, %v278_v43  ;;  %v281_v62 = vsel %vm20_vm0, %v277_v55, %v280_v44  ;;  %v288_v3 = vadd.f32 %v276_v52, %v253_v48  ;;  %v289_v5 = vadd.f32 %v277_v55, %v254_v49 }
  0xaa   :  { %v304_v7 = vsub.f32 %v292_v59, %v523_v53  ;;  %v305_v8 = vsub.f32 %v293_v60, %v526_v54  ;;  %v290_v36 = vadd.f32 %v279_v61, %v255_v57  ;;  %v291_v9 = vadd.f32 %v281_v62, %v256_v58 }
  0xab   :  { %v300_v14 = vsub.f32 %v288_v3, %v543_v56  ;;  %v301_v4 = vsub.f32 %v289_v5, %v546_v50  ;;  %v309_v53 = vmul.f32 0.9, %v384_v1 }
  0xac   :  { %v316_v18 = vmax.f32 %v304_v7, 0.0  ;;  %v317_v19 = vmax.f32 %v305_v8, 0.0  ;;  %v302_v20 = vsub.f32 %v290_v36, %v296_v29  ;;  %v303_v24 = vsub.f32 %v291_v9, %v297_v33 }
  0xad   :  { %v312_v26 = vmax.f32 %v300_v14, 0.0  ;;  %v313_v54 = vmax.f32 %v301_v4, 0.0 }
  0xae   :  { %v322_v27 = vmul.f32 0.010416667, %v316_v18  ;;  %v323_v28 = vmul.f32 0.010416667, %v317_v19  ;;  %v314_v30 = vmax.f32 %v302_v20, 0.0  ;;  %v315_v22 = vmax.f32 %v303_v24, 0.0 }
  0xaf   :  { %v318_v31 = vmul.f32 0.010416667, %v312_v26  ;;  %v319_v0 = vmul.f32 0.010416667, %v313_v54 }
  0xb0   :  { %v328_v56 = vadd.f32 %v322_v27, %v529_v63  ;;  %v329_v50 = vadd.f32 %v323_v28, %v532_v2  ;;  %v320_v32 = vmul.f32 0.010416667, %v314_v30  ;;  %v321_v13 = vmul.f32 0.010416667, %v315_v22 }
  0xb1   :  { %v324_v45 = vadd.f32 %v318_v31, %v306_v11  ;;  %v325_v10 = vadd.f32 %v319_v0, %v307_v12 }
  0xb2   :  { %v342_v15 = vrot.slane %v328_v56, 2  ;;  %v344_v23 = vrot.slane %v329_v50, 2  ;;  %v326_v17 = vadd.f32 %v320_v32, %v308_v25  ;;  %v327_v1 = vadd.f32 %v321_v13, %v309_v53 }
  0xb3   :  { %v336_v21 = vrot.slane %v324_v45, 2  ;;  %v339_v6 = vrot.slane %v325_v10, 2 }
  0xb4   :  { %v337_v29 = vrot.slane %v326_v17, 2  ;;  %v340_v33 = vrot.slane %v327_v1, 2 }
  0xb6   :  { %v338_v34 = vsel %vm109_vm3, %v336_v21, %v337_v29  ;;  %v341_v35 = vsel %vm109_vm3, %v339_v6, %v340_v33  ;;  %v343_v63 = vsel %vm109_vm3, %v337_v29, %v342_v15  ;;  %v345_v2 = vsel %vm109_vm3, %v340_v33, %v344_v23 }
  0xb7   :  { %350 = vst [vmem:[%s599_s1] sm:$0xff] %v338_v34  ;;  %351 = vst [vmem:[%s599_s1 + $0x8] sm:$0xff] %v341_v35 }
  0xb8   :  { %352 = vst [vmem:[%s599_s1 + $0x10] sm:$0xff] %v343_v63  ;;  %353 = vst [vmem:[%s599_s1 + $0x18] sm:$0xff] %v345_v2 }

</bundles_post_ra>
